<compile_context>
chip_gen: v6e
topology: v6e:2x2x1
jax: 0.10.0
libtpu: 0.0.40
codegen_flags: <defaults>
</compile_context>

<pallas_src>
import functools

import jax
import jax.numpy as jnp
from jax.experimental import pallas as pl
from jax.experimental.pallas import tpu as pltpu


def _round_up(x: int, m: int) -> int:
    return (x + m - 1) // m * m


# Only bother single-buffering grid-invariant operands when they are big enough
# for the saved VMEM to matter; small configs keep the default pipelining path.
_SINGLE_BUFFER_MIN_BYTES = 4 << 20


def _grid_invariant_spec(shape, index_map, nbytes):
    if nbytes >= _SINGLE_BUFFER_MIN_BYTES:
        try:
            return pl.BlockSpec(shape, index_map, pipeline_mode=pl.Buffered(1))
        except Exception:  # pipeline_mode unsupported -> default double buffering
            pass
    return pl.BlockSpec(shape, index_map)


def _physical_vmem_bytes() -> int:
    try:
        return int(pltpu.get_tpu_info().vmem_capacity_bytes)
    except Exception:
        return 64 << 20  # conservative fallback (v7x per-TC VMEM)


def head_kernel(x_ref, w1_ref, b1_ref, w2_ref, b2_ref, o_ref, h_ref):
    # x_ref : (bb, in_p)     w1_ref: (in_p, hid_p)   b1_ref: (1, hid_p)
    # w2_ref: (hid_p, bn)    b2_ref: (1, bn)         o_ref : (bb, bn)
    # h_ref : (bb, hid_p) VMEM scratch reused across the j (output-tile) axis.
    j = pl.program_id(1)

    @pl.when(j == 0)
    def _():
        # First matmul + bias + ReLU: computed once per batch tile (j == 0 only).
        h = jnp.dot(x_ref[...].astype(w1_ref.dtype), w1_ref[...],
                    preferred_element_type=jnp.float32)
        h = jnp.maximum(h + b1_ref[...].astype(jnp.float32), 0.0)        # relu_1
        # Dropout(p=0.5): identity in eval/inference mode.
        h_ref[...] = h.astype(h_ref.dtype)

    y = jnp.dot(h_ref[...], w2_ref[...], preferred_element_type=jnp.float32)
    y = jnp.maximum(y + b2_ref[...].astype(jnp.float32), 0.0)            # relu_2
    o_ref[...] = y.astype(o_ref.dtype)


@functools.partial(jax.jit, static_argnames=("out_features", "block_b", "block_n"))
def head_forward(x, w1p, b1p, w2p, b2p, *, out_features, block_b=None, block_n=None):
    """x: (B, in_features).  w1p/b1p/w2p/b2p: lane-padded params from pad_head_params.
    Returns (B, out_features)."""
    B, in_f = x.shape
    in_p, hid_p = w1p.shape
    out_p = w2p.shape[1]
    assert in_f <= in_p and out_features <= out_p and w2p.shape[0] == hid_p

    # ---- dtypes: feed the MXU the weight dtype (bf16 weights -> bf16 x) ---------
    w_item = jnp.dtype(w1p.dtype).itemsize
    if w_item < jnp.dtype(x.dtype).itemsize:
        x_in = x.astype(w1p.dtype)          # halves x HBM + VMEM traffic too
    else:
        x_in = x
    x_item = jnp.dtype(x_in.dtype).itemsize
    out_dtype = x.dtype
    out_item = jnp.dtype(out_dtype).itemsize
    h_dtype = w2p.dtype                     # bf16 second matmul when weights are bf16
    h_item = jnp.dtype(h_dtype).itemsize

    # ---- output tile: fill the 256-wide MXU when possible, keep lane-dense ------
    if block_n is None:
        bn = 256 if out_p % 256 == 0 else 128
    else:
        bn = max(128, min(_round_up(block_n, 128), out_p))
        while out_p % bn != 0:              # out_p is a multiple of 128, so this terminates
            bn -= 128
    n_j = out_p // bn

    # ---- batch tile --------------------------------------------------------------
    B_r8 = _round_up(B, 8)
    if block_b is None:
        bb = min(B_r8, 512)
    else:
        bb = min(_round_up(block_b, 8), B_r8)
    # v7x has 2 TensorCores: keep >= 2 tiles on the "parallel" batch axis when possible.
    if pl.cdiv(B_r8, bb) < 2 and B_r8 >= 16:
        bb = _round_up(pl.cdiv(B_r8, 2), 8)

    # ---- generation-aware VMEM budget (v7x ~54 MiB, v5e/v6e ~108 MiB) ------------
    vmem_cap = int(_physical_vmem_bytes() * 0.85)
    w1_bytes = in_p * hid_p * w_item
    w1_bufs = 1 if w1_bytes >= _SINGLE_BUFFER_MIN_BYTES else 2
    w2_tile_bytes = hid_p * bn * w_item
    w2_bufs = 1 if (n_j == 1 and w2_tile_bytes >= _SINGLE_BUFFER_MIN_BYTES) else 2

    def _vmem_bytes(bb_):
        return (2 * bb_ * in_p * x_item            # x tiles (double-buffered)
                + w1_bufs * w1_bytes               # w1 (grid-invariant)
                + w1_bufs * hid_p * w_item         # b1
                + w2_bufs * w2_tile_bytes          # w2 tiles
                + w2_bufs * bn * w_item            # b2 tiles
                + 2 * bb_ * bn * out_item          # out tiles (double-buffered)
                + bb_ * hid_p * h_item)            # h scratch (single copy)

    while _vmem_bytes(bb) > vmem_cap and bb > 8:
        bb = _round_up(bb // 2, 8)
    vmem_bytes = _vmem_bytes(bb)
    if vmem_bytes > vmem_cap:
        # TODO(synk): K-axis tiling of the first matmul for very large in_features.
        raise ValueError(f"tile config needs {vmem_bytes} B VMEM > cap {vmem_cap} B")

    B_pad = _round_up(B, bb)
    n_i = B_pad // bb
    grid = (n_i, n_j)

    # ---- pad x only when actually misaligned --------------------------------------
    if B_pad != B or in_p != in_f:
        x_in = jnp.pad(x_in, ((0, B_pad - B), (0, in_p - in_f)))

    # ---- cost estimate (h is computed once per batch tile; no recompute factor) ---
    flops = 2 * B_pad * in_p * hid_p + 2 * B_pad * hid_p * out_p
    w2_fetches = n_i if n_j > 1 else 1
    bytes_accessed = (
        B_pad * in_p * x_item
        + (in_p * hid_p + hid_p) * w_item
        + w2_fetches * (hid_p * out_p + out_p) * w_item
        + B_pad * out_p * out_item
    )
    cost = pl.CostEstimate(flops=flops, transcendentals=0, bytes_accessed=bytes_accessed)

    vmem_limit = min(max(int(vmem_bytes * 1.3) + (4 << 20), 16 << 20), vmem_cap)

    # ---- BlockSpecs ---------------------------------------------------------------
    x_spec = pl.BlockSpec((bb, in_p), lambda i, j: (i, 0))
    w1_spec = _grid_invariant_spec((in_p, hid_p), lambda i, j: (0, 0), w1_bytes)
    b1_spec = _grid_invariant_spec((1, hid_p), lambda i, j: (0, 0), hid_p * w_item)
    if n_j == 1:
        w2_spec = _grid_invariant_spec((hid_p, bn), lambda i, j: (0, j), w2_tile_bytes)
        b2_spec = _grid_invariant_spec((1, bn), lambda i, j: (0, j), bn * w_item)
    else:
        w2_spec = pl.BlockSpec((hid_p, bn), lambda i, j: (0, j))
        b2_spec = pl.BlockSpec((1, bn), lambda i, j: (0, j))

    out_padded = pl.pallas_call(
        head_kernel,
        out_shape=jax.ShapeDtypeStruct((B_pad, out_p), out_dtype),
        grid_spec=pltpu.PrefetchScalarGridSpec(
            num_scalar_prefetch=0,
            grid=grid,
            in_specs=[x_spec, w1_spec, b1_spec, w2_spec, b2_spec],
            out_specs=pl.BlockSpec((bb, bn), lambda i, j: (i, j)),
            scratch_shapes=[pltpu.VMEM((bb, hid_p), h_dtype)],
        ),
        compiler_params=pltpu.CompilerParams(
            # j must be "arbitrary": a core-sharded j starting at j != 0 would read
            # an uninitialized h scratch.
            dimension_semantics=("parallel", "arbitrary"),
            vmem_limit_bytes=vmem_limit,
        ),
        cost_estimate=cost,
    )(x_in, w1p, b1p, w2p, b2p)

    return out_padded[:B, :out_features]


def pad_head_params(w1, b1, w2, b2):
    """Zero-pad params to lane-dense (128-multiple) shapes ONCE at init/load time,
    so the per-call forward never copies the weights."""
    in_f, hidden = w1.shape
    out_f = w2.shape[1]
    in_p = _round_up(in_f, 128)
    hid_p = _round_up(hidden, 128)
    out_p = _round_up(out_f, 128)
    w1p = jnp.pad(w1, ((0, in_p - in_f), (0, hid_p - hidden)))
    b1p = jnp.pad(b1, ((0, 0), (0, hid_p - hidden)))
    w2p = jnp.pad(w2, ((0, hid_p - hidden), (0, out_p - out_f)))
    b2p = jnp.pad(b2, ((0, 0), (0, out_p - out_f)))
    return w1p, b1p, w2p, b2p


def init_head_params(key, in_features, out_features, hidden=256, dtype=jnp.float32):
    """Deterministic PyTorch-style (Kaiming-uniform-ish) init. Weights stored transposed.
    Pass dtype=jnp.bfloat16 for v6e/v7x MXU throughput (f32 accumulation kept in-kernel)."""
    k1, k2, k3, k4 = jax.random.split(key, 4)
    bound1 = 1.0 / jnp.sqrt(in_features)
    bound2 = 1.0 / jnp.sqrt(hidden)
    w1 = jax.random.uniform(k1, (in_features, hidden), dtype, -bound1, bound1)
    b1 = jax.random.uniform(k2, (1, hidden), dtype, -bound1, bound1)
    w2 = jax.random.uniform(k3, (hidden, out_features), dtype, -bound2, bound2)
    b2 = jax.random.uniform(k4, (1, out_features), dtype, -bound2, bound2)
    return w1, b1, w2, b2


if __name__ == "__main__":
    key = jax.random.PRNGKey(0)
    k_x, k_p = jax.random.split(key)

    # Small shapes consistent with the module. out_features=320 -> out_p=384 with
    # bn=128 exercises the multi-j grid + h-scratch reuse; in_features=96 exercises
    # lane padding (96 -> 128); batch=48 with block_b=16 gives a multi-tile batch axis.
    batch = 48
    in_features = 96
    out_features = 320

    x = jax.random.normal(k_x, (batch, in_features), dtype=jnp.float32)
    w1, b1, w2, b2 = init_head_params(k_p, in_features, out_features)
    w1p, b1p, w2p, b2p = pad_head_params(w1, b1, w2, b2)   # padded once, not per call

    # pure-JAX reference (eval-mode dropout = identity), true f32 matmuls
    hp = jax.lax.Precision.HIGHEST
    ref_h = jnp.maximum(jnp.dot(x, w1, precision=hp) + b1, 0.0)
    ref = jnp.maximum(jnp.dot(ref_h, w2, precision=hp) + b2, 0.0)

    # Explicit small tiles (multi-i, multi-j grid).
    out = head_forward(x, w1p, b1p, w2p, b2p,
                       out_features=out_features, block_b=16, block_n=128)
    out = jax.block_until_ready(out)
    assert out.shape == (batch, out_features)
    assert jnp.allclose(out, ref, atol=1e-4, rtol=1e-4)

    # Auto-picked tiles (generation-aware defaults).
    out2 = head_forward(x, w1p, b1p, w2p, b2p, out_features=out_features)
    out2 = jax.block_until_ready(out2)
    assert out2.shape == (batch, out_features)
    assert jnp.allclose(out2, ref, atol=1e-4, rtol=1e-4)

    print("KERNEL_OK")
</pallas_src>

<mosaic_0001>
module attributes {stable_mosaic.version = 11 : i64} {
  func.func @head_kernel(%arg0: i32, %arg1: i32, %arg2: memref<16x128xf32, #tpu.memory_space<vmem>>, %arg3: memref<128x256xf32, #tpu.memory_space<vmem>>, %arg4: memref<1x256xf32, #tpu.memory_space<vmem>>, %arg5: memref<256x128xf32, #tpu.memory_space<vmem>>, %arg6: memref<1x128xf32, #tpu.memory_space<vmem>>, %arg7: memref<16x128xf32, #tpu.memory_space<vmem>>, %arg8: memref<16x256xf32, #tpu.memory_space<vmem>>) attributes {dimension_semantics = [#tpu.dimension_semantics<parallel>, #tpu.dimension_semantics<arbitrary>], iteration_bounds = array<i64: 3, 3>, scalar_prefetch = 0 : i64, scratch_operands = 1 : i64, tpu.core_type = #tpu.core_type<tc>, window_params = [{transform_indices = @transform_0, window_bounds = array<i64: 16, 128>}, {pipeline_mode = #tpu.pipeline_mode<synchronous>, transform_indices = @transform_1, window_bounds = array<i64: 128, 256>}, {pipeline_mode = #tpu.pipeline_mode<synchronous>, transform_indices = @transform_2, window_bounds = array<i64: 1, 256>}, {transform_indices = @transform_3, window_bounds = array<i64: 256, 128>}, {transform_indices = @transform_4, window_bounds = array<i64: 1, 128>}, {transform_indices = @transform_5, window_bounds = array<i64: 16, 128>}]} {
    %c0_i32 = arith.constant 0 : i32
    %0 = arith.cmpi eq, %arg1, %c0_i32 : i32
    %1 = arith.extui %0 : i1 to i32
    %c0_i32_0 = arith.constant 0 : i32
    %2 = arith.cmpi ne, %1, %c0_i32_0 : i32
    scf.if %2 {
      %c0_9 = arith.constant 0 : index
      %c0_10 = arith.constant 0 : index
      %12 = vector.load %arg2[%c0_9, %c0_10] : memref<16x128xf32, #tpu.memory_space<vmem>>, vector<16x128xf32>
      %c0_11 = arith.constant 0 : index
      %c0_12 = arith.constant 0 : index
      %13 = vector.load %arg3[%c0_11, %c0_12] : memref<128x256xf32, #tpu.memory_space<vmem>>, vector<128x256xf32>
      %cst_13 = arith.constant dense<0.000000e+00> : vector<16x256xf32>
      %14 = tpu.matmul %12, %13, %cst_13 {dimension_numbers = #tpu.dot_dimension_numbers<[1], [0], [0], [1], [0, 0, 1, 1], [], []>} : vector<16x128xf32>, vector<128x256xf32>, vector<16x256xf32> -> vector<16x256xf32>
      %c0_14 = arith.constant 0 : index
      %c0_15 = arith.constant 0 : index
      %15 = vector.load %arg4[%c0_14, %c0_15] : memref<1x256xf32, #tpu.memory_space<vmem>>, vector<1x256xf32>
      %16 = vector.broadcast %15 : vector<1x256xf32> to vector<16x256xf32>
      %17 = arith.addf %14, %16 : vector<16x256xf32>
      %cst_16 = arith.constant 0.000000e+00 : f32
      %18 = vector.broadcast %cst_16 : f32 to vector<16x256xf32>
      %19 = arith.maximumf %17, %18 : vector<16x256xf32>
      %c0_17 = arith.constant 0 : index
      %c0_18 = arith.constant 0 : index
      %20 = vector.load %arg8[%c0_17, %c0_18] : memref<16x256xf32, #tpu.memory_space<vmem>>, vector<16x256xf32>
      tpu.vector_store %arg8[%c0_17, %c0_18], %19 {strides = array<i32>} : memref<16x256xf32, #tpu.memory_space<vmem>>, vector<16x256xf32>,
    } else {
    }
    %c0 = arith.constant 0 : index
    %c0_1 = arith.constant 0 : index
    %3 = vector.load %arg8[%c0, %c0_1] : memref<16x256xf32, #tpu.memory_space<vmem>>, vector<16x256xf32>
    %c0_2 = arith.constant 0 : index
    %c0_3 = arith.constant 0 : index
    %4 = vector.load %arg5[%c0_2, %c0_3] : memref<256x128xf32, #tpu.memory_space<vmem>>, vector<256x128xf32>
    %cst = arith.constant dense<0.000000e+00> : vector<16x128xf32>
    %5 = tpu.matmul %3, %4, %cst {dimension_numbers = #tpu.dot_dimension_numbers<[1], [0], [0], [1], [0, 0, 1, 1], [], []>} : vector<16x256xf32>, vector<256x128xf32>, vector<16x128xf32> -> vector<16x128xf32>
    %c0_4 = arith.constant 0 : index
    %c0_5 = arith.constant 0 : index
    %6 = vector.load %arg6[%c0_4, %c0_5] : memref<1x128xf32, #tpu.memory_space<vmem>>, vector<1x128xf32>
    %7 = vector.broadcast %6 : vector<1x128xf32> to vector<16x128xf32>
    %8 = arith.addf %5, %7 : vector<16x128xf32>
    %cst_6 = arith.constant 0.000000e+00 : f32
    %9 = vector.broadcast %cst_6 : f32 to vector<16x128xf32>
    %10 = arith.maximumf %8, %9 : vector<16x128xf32>
    %c0_7 = arith.constant 0 : index
    %c0_8 = arith.constant 0 : index
    %11 = vector.load %arg7[%c0_7, %c0_8] : memref<16x128xf32, #tpu.memory_space<vmem>>, vector<16x128xf32>
    tpu.vector_store %arg7[%c0_7, %c0_8], %10 {strides = array<i32>} : memref<16x128xf32, #tpu.memory_space<vmem>>, vector<16x128xf32>,
    return
  }
  func.func @transform_0(%arg0: i32, %arg1: i32) -> (i32, i32) {
    %c0_i32 = arith.constant 0 : i32
    %c0_i32_0 = arith.constant 0 : i32
    return %arg0, %c0_i32 : i32, i32
  }
  func.func @transform_1(%arg0: i32, %arg1: i32) -> (i32, i32) {
    %c0_i32 = arith.constant 0 : i32
    %c0_i32_0 = arith.constant 0 : i32
    %c0_i32_1 = arith.constant 0 : i32
    return %c0_i32, %c0_i32_0 : i32, i32
  }
  func.func @transform_2(%arg0: i32, %arg1: i32) -> (i32, i32) {
    %c0_i32 = arith.constant 0 : i32
    %c0_i32_0 = arith.constant 0 : i32
    %c0_i32_1 = arith.constant 0 : i32
    return %c0_i32, %c0_i32_0 : i32, i32
  }
  func.func @transform_3(%arg0: i32, %arg1: i32) -> (i32, i32) {
    %c0_i32 = arith.constant 0 : i32
    %c0_i32_0 = arith.constant 0 : i32
    return %c0_i32, %arg1 : i32, i32
  }
  func.func @transform_4(%arg0: i32, %arg1: i32) -> (i32, i32) {
    %c0_i32 = arith.constant 0 : i32
    %c0_i32_0 = arith.constant 0 : i32
    return %c0_i32, %arg1 : i32, i32
  }
  func.func @transform_5(%arg0: i32, %arg1: i32) -> (i32, i32) {
    %c0_i32 = arith.constant 0 : i32
    return %arg0, %arg1 : i32, i32
  }
}

</mosaic_0001>

<bundles_post_ra>
// kernel: head_forward.1
= control target key start
LH: loop header
LB: loop body
LE: loop exit
PB: predicated region body
PF: predicated region fallthrough
CT: control target
= control target key end

     0   :  { %s1462_s0 = inlined_call_operand.vmem [shape: f32[48,128], index: 0, kind: input, shape index: {}]   ;;  %s1463_s1 = inlined_call_operand.hbm [shape: f32[128,256], index: 1, kind: input, shape index: {}]   ;;  %s1464_s2 = inlined_call_operand.vmem [shape: f32[1,256], index: 2, kind: input, shape index: {}]   ;;  %s1465_s3 = inlined_call_operand.hbm [shape: f32[256,384], index: 3, kind: input, shape index: {}]   ;;  %s1466_s4 = inlined_call_operand.vmem [shape: f32[1,384], index: 4, kind: input, shape index: {}]   ;;  %s1467_s5 = inlined_call_operand.hbm [shape: f32[48,384], index: 5, kind: output, shape index: {}]  }
   0x1   :  { %1481 = sst [smem:[#allocation19_spill]] %s1463_s1 }
   0x2   :  { %1482 = sst [smem:[#allocation20_spill]] %s1464_s2 }
   0x3   :  { %1483 = sst [smem:[#allocation21_spill]] %s1467_s5 }
   0x4   :  { %10 = vsyncpa [#allocation4], 0 }
   0x5   :  { %11 = vsyncpa [#allocation7], 0 }
   0x6   :  { %13 = vsyncpa [#allocation7 + $0x1], 0 }
   0x7   :  { %14 = vsyncpa [#allocation5], 0 }
   0x8   :  { %16 = vsyncpa [#allocation5 + $0x1], 0  ;;  %s1168_s18 = smov 0   ;;  %s1170_s19 = smov 0  }
   0x9   :  { %s1172_s20 = smov 0   ;;  %s1174_s21 = smov 0  }
   0xa   :  { %s1176_s22 = smov 0   ;;  %s1178_s23 = smov 0  }
   0xb   :  { %s1180_s24 = smov 0   ;;  %s1182_s25 = smov 0  }
   0xc   :  { %s1184_s26 = smov 0   ;;  %s1186_s27 = smov 0  }
   0xd   :  { %s1188_s28 = smov 0  }
   0xe LB: > { %1484 = sst [smem:[#allocation12_spill]] %s1084_s18  ;;  %s700_s29 = sadd.s32 4294967295, %s1124_s28   ;;  %s1124_s28 = sphi %s1188_s28, %s22_s28   ;;  %s1120_s27 = sphi %s1186_s27, %s1522_s27   ;;  %s1116_s26 = sphi %s1184_s26, %s1513_s26   ;;  %s1112_s25 = sphi %s1182_s25, %s1521_s25   ;;  %s1108_s24 = sphi %s1180_s24, %s1512_s24   ;;  %s1104_s23 = sphi %s1178_s23, %s1520_s23   ;;  %s1100_s22 = sphi %s1176_s22, %s1519_s22   ;;  %s1096_s21 = sphi %s1174_s21, %s1518_s21   ;;  %s1092_s20 = sphi %s1172_s20, %s1517_s20   ;;  %s1088_s19 = sphi %s1170_s19, %s1516_s19   ;;  %s1084_s18 = sphi %s1168_s18, %s1515_s18  }
   0xf   : > { %1485 = sst [smem:[#allocation13_spill]] %s1116_s26  ;;  %s701_s30 = sadd.s32 4294967294, %s1124_s28  }
  0x10   : > { %1486 = sst [smem:[#allocation14_spill]] %s1124_s28  ;;  %p116_p0 = scmp.ne.s32.totalorder %s1104_s23, %s1100_s22 }
  0x11   : > { %p117_p1 = scmp.eq.s32.totalorder %s1124_s28, 0  ;;  %p122_p2 = scmp.ne.s32.totalorder %s1100_s22, %s1096_s21 }
  0x12   : > { %p1228_p3 = scmp.eq.s32.totalorder %s700_s29, 0  ;;  %p173_p5 = scmp.ne.s32.totalorder %s1092_s20, %s1088_s19 }
  0x13   : > { %p1233_p4 = por %p117_p1, %p116_p0  ;;  %p174_p7 = scmp.eq.s32.totalorder %s700_s29, 8 }
  0x14   : > { %p1241_p6 = por %p1228_p3, %p122_p2  ;;  %p179_p8 = scmp.ne.s32.totalorder %s1088_s19, %s1084_s18 }
  0x15   : > { %p180_p9 = scmp.eq.s32.totalorder %s701_s30, 8  ;;  %p1247_p10 = por %p174_p7, %p173_p5 }
  0x16   : > { %s1489_s10 = scalar_select %p1241_p6, 1, 0 }
  0x17   : > { %s1490_s11 = scalar_select %p1247_p10, 1, 0 }
  0x18   : > { %p702_p11 = scmp.ge.s32.totalorder %s1124_s28, 1  ;;  %p1252_p12 = por %p180_p9, %p179_p8 }
  0x19   : > { %1491 = sst [smem:[#allocation15_spill]] %s1490_s11  ;;  %p187_p13 = scmp.lt.s32.totalorder %s1124_s28, 10 }
  0x1a   : > { %s1492_s12 = scalar_select %p1252_p12, 1, 0 }
  0x1b   : > { %p1257_p0 = pnand %p702_p11, %p187_p13  ;;  %s1126_s14 = smov [#allocation3]  }
  0x1c   : > { %1493 = sst [smem:[#allocation16_spill]] %s1492_s12  ;;  %s199_s15 = sshll.u32 %s1126_s14, 4  ;;  %s200_s15 = int_to_ptr.vmem [resolvable:$true] %s199_s15 }
  0x1d   : > { %s1494_s13 = scalar_select %p1257_p0, 1, 0 }
  0x1e   : > { %p832_p1 = pneg %p1257_p0  ;;  %p845_p2 = scmp.lt.s32.totalorder %s1124_s28, 9 }
  0x1f   : > { %s957_s21 = scalar_lea.vmem %s200_s15, 4096  ;;  %p965_p12 = scmp.lt.s32.totalorder %s200_s15, %s200_s15 }
  0x20   : > { %p1266_p5 = pnand %p832_p1, %p1228_p3  ;;  %p1272_p7 = pnand %p845_p2, %p1233_p4 }
  0x21   : > { %p958_p9 = scmp.ne.s32.totalorder %s200_s15, %s957_s21  ;;  %p966_p10 = scmp.lt.s32.totalorder %s957_s21, %s957_s21 }
  0x22   : > { %p948_p8 = pneg %p1266_p5 }
  0x23   : > { %p967_p6 = por %p966_p10, %p965_p12 }
  0x24   : > { %p960_p11 = pnand %p958_p9, %p948_p8 }
  0x26   : > { %p961_p13 = pneg %p960_p11 }
  0x28   : > { %p968_p0 = pnand %p967_p6, %p961_p13 }
  0x2a   : > { %971 = shalt.err (!%p968_p0)
}
  0x2b   : > { %s1127_s29 = smov 256   ;;  %s1128_s30 = smov 16  }
  0x2c   : > { %s1497_s1 = sld [smem:[#allocation19_spill]]  ;;  %s31_s21 = sadd.s32 1, %s1116_s26 }
  0x2d   : > { %s34_s8 = sadd.s32 1, %s1120_s27  ;;  %p32_p4 = scmp.ge.s32.totalorder %s31_s21, 3 }
  0x2e   : > { %s225_s6 = sand.u32 1, %s1104_s23   ;;  %s706_s9 = sshll.u32 %s1116_s26, 7 }
  0x2f   : > { %s705_s12 = sshll.u32 %s225_s6, 8  ;;  %s1524_s21 = smov (%p32_p4, %s31_s21), 0 }
  0x30   : > { %1498 = sst [smem:[#allocation17_spill]] %s1524_s21  ;;  %s1526_s8 = smov (!%p32_p4, %s34_s8), %s1120_s27 }
  0x31   : > { %s106_s16 = ssub.s32 %s1116_s26, %s1524_s21  ;;  %p36_p6 = scmp.ge.s32.totalorder %s1526_s8, 3 }
  0x32   : > { %835 = dma.hbm_to_vmem [thread:$0]  (!%p1266_p5), %s1497_s1, 4096, %s200_s15, [#allocation4], %s1127_s29, %s1127_s29, %s1128_s30  }
  0x33   : > { %p107_p10 = scmp.eq.s32.totalorder %s106_s16, 0  ;;  %s229_s14 = scalar_lea.vmem [#allocation6], %s705_s12 }
  0x34   : > { %s235_s18 = sshll.u32 %s229_s14, 4  ;;  %s1528_s8 = smov (%p36_p6, %s1526_s8), 0  ;;  %s236_s18 = int_to_ptr.vmem [resolvable:$true] %s235_s18 }
  0x35   : > { %1499 = sst [smem:[#allocation18_spill]] %s1528_s8  ;;  %s1500_s15 = sadd.s32 1, %s1104_s23 }
  0x36   : > { %s1297_s29 = scalar_select %p107_p10, %s1104_s23, %s1500_s15  }
  0x37   : > { %s158_s30 = ssub.s32 %s1120_s27, %s1528_s8  ;;  %s234_s5 = scalar_lea.hbm %s1465_s3, %s706_s9 }
  0x38   : > { %s160_s11 = sor.u32 %s158_s30, %s106_s16  ;;  %s1501_s21 = sadd.s32 1, %s1092_s20 }
  0x39   : > { %p161_p12 = scmp.eq.s32.totalorder %s160_s11, 0  ;;  %s226_s26 = scalar_lea.sflag [#allocation7], %s225_s6 }
  0x3a   : > { %p974_p0 = pneg %p1272_p7  ;;  %s985_s12 = scalar_lea.vmem %s236_s18, 4096 }
  0x3b   : > { %s1307_s2 = scalar_select %p161_p12, %s1092_s20, %s1501_s21  }
  0x3c   : > { %p986_p1 = scmp.ne.s32.totalorder %s236_s18, %s985_s12  ;;  %s1129_s14 = smov [#allocation6]  }
  0x3d   : > { %s990_s15 = sshll.u32 %s1129_s14, 4  ;;  %s991_s15 = int_to_ptr.vmem [resolvable:$false] %s990_s15 }
  0x3e   : > { %p988_p2 = pnand %p986_p1, %p974_p0  ;;  %s992_s8 = scalar_lea.vmem %s991_s15, 8192 }
  0x3f   : > { %p993_p8 = scmp.lt.s32.totalorder %s236_s18, %s991_s15  ;;  %p994_p9 = scmp.lt.s32.totalorder %s992_s8, %s985_s12 }
  0x40   : > { %p989_p5 = pneg %p988_p2 }
  0x41   : > { %p995_p11 = por %p994_p9, %p993_p8 }
  0x43   : > { %p996_p13 = pnand %p995_p11, %p989_p5 }
  0x45   : > { %999 = shalt.err (!%p996_p13)
}
  0x46   : > { %s1130_s1 = smov 384   ;;  %s1131_s28 = smov 128  }
  0x47   : > { %s1132_s11 = smov 8   ;;  %p1502_p4 = scmp.ne.s32.totalorder %s1494_s13, 0 }
  0x48   : > { %839 = dma.hbm_to_vmem [thread:$0]  (!%p1272_p7), %s234_s5, 4096, %s236_s18, %s226_s26, %s1130_s1, %s1131_s28, %s1132_s11  }
  0x49   : > { %253 = sbr.rel (%p1502_p4) target bundleno = 577 (0x241), region = 40 }
  0x4e   : > { %1071 = dma.done.wait (%p1228_p3), [#allocation4], 4096  }
  0x4f   : > { %1073 = vsyncadd (%p1228_p3), [#allocation4], 4294963200  ;;  %s259_s6 = sand.u32 1, %s1100_s22   ;;  %p1503_p6 = scmp.ne.s32.totalorder %s1489_s10, 0 }
  0x50   : > { %s709_s8 = sshll.u32 %s259_s6, 8  ;;  %s260_s21 = scalar_lea.sflag [#allocation7], %s259_s6 }
  0x51   : > { %s1320_s16 = scalar_lea.vmem [#allocation6], %s709_s8 }
  0x52   : > { %1075 = dma.done.wait (%p1503_p6), %s260_s21, 4096  }
  0x53   : > { %1077 = vsyncadd (%p1503_p6), %s260_s21, 4294963200  ;;  %s295_s5 = sand.u32 1, %s1088_s19   ;;  %s711_s18 = sshll.u32 %s1112_s25, 1 }
  0x54   : > { %s710_s26 = sshll.u32 %s295_s5, 4  ;;  %p299_p3 = scmp.lt.s32.totalorder %s711_s18, 5 }
  0x55   : > { %p304_p7 = scmp.lt.s32.totalorder %s1108_s24, 2  ;;  %s1343_s15 = scalar_lea.vmem [#allocation8], %s710_s26 }
  0x56   : > { %s1530_s18 = smov (!%p299_p3, %s711_s18), 5  ;;  %p713_p10 = scmp.ne.s32.totalorder %s1108_s24, 0 }
  0x57   : > { %s1332_s7 = scalar_select %p304_p7, %s1108_s24, 2 }
  0x58   : > { %s712_s13 = sshll.u32 %s1530_s18, 3  ;;  %311 = sbr.rel (%p713_p10) target bundleno = 327 (0x147), region = 52 }
  0x59   : > { %s1337_s10 = scalar_lea.vmem %s1462_s0, %s712_s13  ;;  %s306_s14 = scalar_lea.vmem %s1466_s4, %s1332_s7 }
  0x5a   : > { %s1504_s11 = sld [smem:[#allocation20_spill]] (!%p713_p10) }
  0x5d   : > { %v345_v0 = vld [vmem:[#allocation3 + $0xf8] sm:$0xff]  ;;  %v344_v1 = vld [vmem:[#allocation3 + $0xf0] sm:$0xff]  ;;  %v343_v2 = vld [vmem:[#allocation3 + $0xe8] sm:$0xff]  ;;  %v1133_v34 = vmov 0.0   ;;  %v348_v35 = vlaneseq }
  0x5e   : > { %358 = vmatprep.subr.mxu0 %v345_v0  ;;  %759 = vmatprep.subr.mxu1 %v345_v0  ;;  %v342_v3 = vld [vmem:[#allocation3 + $0xe0] sm:$0xff]  ;;  %v341_v4 = vld [vmem:[#allocation3 + $0xd8] sm:$0xff]  ;;  %v340_v5 = vld [vmem:[#allocation3 + $0xd0] sm:$0xff] }
  0x5f   : > { %359 = vmatpush1.msra.mxu0 %v344_v1  ;;  %775 = vmatpush1.msra.mxu1 %v344_v1  ;;  %v339_v6 = vld [vmem:[#allocation3 + $0xc8] sm:$0xff]  ;;  %v338_v7 = vld [vmem:[#allocation3 + $0xc0] sm:$0xff]  ;;  %v337_v8 = vld [vmem:[#allocation3 + $0xb8] sm:$0xff]  ;;  %v349_v36 = vshrl.u32 %v348_v35, 7 }
  0x60   : > { %360 = vmatprep.subr.mxu0 %v343_v2  ;;  %760 = vmatprep.subr.mxu1 %v343_v2  ;;  %v336_v9 = vld [vmem:[#allocation3 + $0xb0] sm:$0xff]  ;;  %v335_v10 = vld [vmem:[#allocation3 + $0xa8] sm:$0xff]  ;;  %v334_v11 = vld [vmem:[#allocation3 + $0xa0] sm:$0xff] }
  0x61   : > { %361 = vmatpush1.msra.mxu0 %v342_v3  ;;  %776 = vmatpush1.msra.mxu1 %v342_v3  ;;  %v333_v12 = vld [vmem:[#allocation3 + $0x98] sm:$0xff]  ;;  %v332_v13 = vld [vmem:[#allocation3 + $0x90] sm:$0xff]  ;;  %v331_v14 = vld [vmem:[#allocation3 + $0x88] sm:$0xff]  ;;  %v350_v37 = vsub.s32 0, %v349_v36  ;;  %v354_v39 = vsub.s32 1, %v349_v36 }
  0x62   : > { %362 = vmatprep.subr.mxu0 %v341_v4  ;;  %761 = vmatprep.subr.mxu1 %v341_v4  ;;  %v330_v15 = vld [vmem:[#allocation3 + $0x80] sm:$0xff]  ;;  %v329_v16 = vld [vmem:[#allocation3 + $0x78] sm:$0xff]  ;;  %v328_v17 = vld [vmem:[#allocation3 + $0x70] sm:$0xff] }
  0x63   : > { %363 = vmatpush1.msra.mxu0 %v340_v5  ;;  %777 = vmatpush1.msra.mxu1 %v340_v5  ;;  %v327_v18 = vld [vmem:[#allocation3 + $0x68] sm:$0xff]  ;;  %v326_v19 = vld [vmem:[#allocation3 + $0x60] sm:$0xff]  ;;  %v325_v20 = vld [vmem:[#allocation3 + $0x58] sm:$0xff] }
  0x64   : > { %364 = vmatprep.subr.mxu0 %v339_v6  ;;  %762 = vmatprep.subr.mxu1 %v339_v6  ;;  %v324_v21 = vld [vmem:[#allocation3 + $0x50] sm:$0xff]  ;;  %v323_v22 = vld [vmem:[#allocation3 + $0x48] sm:$0xff]  ;;  %v322_v23 = vld [vmem:[#allocation3 + $0x40] sm:$0xff] }
  0x65   : > { %365 = vmatpush1.msra.mxu0 %v338_v7  ;;  %778 = vmatpush1.msra.mxu1 %v338_v7  ;;  %v321_v24 = vld [vmem:[#allocation3 + $0x38] sm:$0xff]  ;;  %v320_v25 = vld [vmem:[#allocation3 + $0x30] sm:$0xff]  ;;  %v319_v26 = vld [vmem:[#allocation3 + $0x28] sm:$0xff] }
  0x66   : > { %366 = vmatprep.subr.mxu0 %v337_v8  ;;  %763 = vmatprep.subr.mxu1 %v337_v8  ;;  %v318_v27 = vld [vmem:[#allocation3 + $0x20] sm:$0xff]  ;;  %v317_v28 = vld [vmem:[#allocation3 + $0x18] sm:$0xff]  ;;  %v316_v29 = vld [vmem:[#allocation3 + $0x10] sm:$0xff] }
  0x67   : > { %367 = vmatpush1.msra.mxu0 %v336_v9  ;;  %779 = vmatpush1.msra.mxu1 %v336_v9  ;;  %v315_v30 = vld [vmem:[#allocation3 + $0x8] sm:$0xff]  ;;  %v314_v31 = vld [vmem:[#allocation3] sm:$0xff] }
  0x68   : > { %368 = vmatprep.subr.mxu0 %v335_v10  ;;  %764 = vmatprep.subr.mxu1 %v335_v10  ;;  %v312_v32 = vld [vmem:[%s1337_s10] sm:$0xff]  ;;  %v313_v33 = vld [vmem:[%s1337_s10 + $0x8] sm:$0xff] }
  0x69   : > { %369 = vmatpush1.msra.mxu0 %v334_v11  ;;  %780 = vmatpush1.msra.mxu1 %v334_v11  ;;  %v346_v38 = vld [vmem:[%s1504_s11] sm:$0x3] }
  0x6a   : > { %370 = vmatprep.subr.mxu0 %v333_v12  ;;  %765 = vmatprep.subr.mxu1 %v333_v12  ;;  %v351_v40 = vrot.slane %v346_v38, %v350_v37  ;;  %v355_v41 = vrot.slane %v346_v38, %v354_v39 }
  0x6b   : > { %371 = vmatpush1.msra.mxu0 %v332_v13  ;;  %781 = vmatpush1.msra.mxu1 %v332_v13 }
  0x6c   : > { %372 = vmatprep.subr.mxu0 %v331_v14  ;;  %766 = vmatprep.subr.mxu1 %v331_v14 }
  0x6d   : > { %373 = vmatpush1.msra.mxu0 %v330_v15  ;;  %782 = vmatpush1.msra.mxu1 %v330_v15 }
  0x6e   : > { %374 = vmatprep.subr.mxu0 %v329_v16  ;;  %767 = vmatprep.subr.mxu1 %v329_v16 }
  0x6f   : > { %375 = vmatpush1.msra.mxu0 %v328_v17  ;;  %783 = vmatpush1.msra.mxu1 %v328_v17 }
  0x70   : > { %376 = vmatprep.subr.mxu0 %v327_v18  ;;  %768 = vmatprep.subr.mxu1 %v327_v18 }
  0x71   : > { %377 = vmatpush1.msra.mxu0 %v326_v19  ;;  %784 = vmatpush1.msra.mxu1 %v326_v19 }
  0x72   : > { %378 = vmatprep.subr.mxu0 %v325_v20  ;;  %769 = vmatprep.subr.mxu1 %v325_v20 }
  0x73   : > { %379 = vmatpush1.msra.mxu0 %v324_v21  ;;  %785 = vmatpush1.msra.mxu1 %v324_v21 }
  0x74   : > { %380 = vmatprep.subr.mxu0 %v323_v22  ;;  %770 = vmatprep.subr.mxu1 %v323_v22 }
  0x75   : > { %381 = vmatpush1.msra.mxu0 %v322_v23  ;;  %786 = vmatpush1.msra.mxu1 %v322_v23 }
  0x76   : > { %382 = vmatprep.subr.mxu0 %v321_v24  ;;  %771 = vmatprep.subr.mxu1 %v321_v24 }
  0x77   : > { %383 = vmatpush1.msra.mxu0 %v320_v25  ;;  %787 = vmatpush1.msra.mxu1 %v320_v25 }
  0x78   : > { %384 = vmatprep.subr.mxu0 %v319_v26  ;;  %772 = vmatprep.subr.mxu1 %v319_v26 }
  0x79   : > { %385 = vmatpush1.msra.mxu0 %v318_v27  ;;  %788 = vmatpush1.msra.mxu1 %v318_v27 }
  0x7a   : > { %386 = vmatprep.subr.mxu0 %v317_v28  ;;  %773 = vmatprep.subr.mxu1 %v317_v28 }
  0x7b   : > { %387 = vmatpush1.msra.mxu0 %v316_v29  ;;  %789 = vmatpush1.msra.mxu1 %v316_v29 }
  0x7c   : > { %388 = vmatprep.subr.mxu0 %v315_v30  ;;  %774 = vmatprep.subr.mxu1 %v315_v30 }
  0x7d   : > { %389 = vmatpush1.msra.mxu0 %v314_v31  ;;  %790 = vmatpush1.msra.mxu1 %v314_v31 }
  0x7e   : > { %422 = vmatprep.mubr.f32.mxu0 %v1133_v34  ;;  %428 = vmatprep.mubr.f32.mxu1 %v1133_v34 }
  0x7f   : > { %423 = vmatmul.mubr.f32.vlgmr.msra.gmra.mxu0 %v312_v32  ;;  %429 = vmatmul.mubr.f32.vlgmr.msra.gmra.mxu1 %v313_v33 }
 0x13f   : > { %v424_v42 = vpop.f32.mrf.mxu0  ;;  %v430_v43 = vpop.f32.mrf.mxu1 }
 0x140   : > { %v425_v44 = vadd.f32 %v424_v42, %v351_v40  ;;  %v431_v45 = vadd.f32 %v430_v43, %v351_v40 }
 0x141   : > { %v426_v46 = vpop.f32.mrf.mxu0  ;;  %v432_v47 = vpop.f32.mrf.mxu1 }
 0x142   : > { %v435_v48 = vmax.f32 %v425_v44, 0.0  ;;  %v437_v49 = vmax.f32 %v431_v45, 0.0  ;;  %v427_v50 = vadd.f32 %v426_v46, %v355_v41  ;;  %v433_v51 = vadd.f32 %v432_v47, %v355_v41 }
 0x144   : > { %439 = vst [vmem:[#allocation2 + $0x10] sm:$0xff] %v435_v48  ;;  %441 = vst [vmem:[#allocation2 + $0x18] sm:$0xff] %v437_v49  ;;  %v436_v52 = vmax.f32 %v427_v50, 0.0  ;;  %v438_v53 = vmax.f32 %v433_v51, 0.0 }
 0x146   : > { %440 = vst [vmem:[#allocation2] sm:$0xff] %v436_v52  ;;  %442 = vst [vmem:[#allocation2 + $0x8] sm:$0xff] %v438_v53 }
 0x147 PF: > { %v478_v54 = vld [vmem:[%s1320_s16 + $0xf8] sm:$0xff]  ;;  %v477_v56 = vld [vmem:[%s1320_s16 + $0xf0] sm:$0xff]  ;;  %v476_v58 = vld [vmem:[%s1320_s16 + $0xe8] sm:$0xff]  ;;  %s823_s6 = smul.u32 6, %s1112_s25  ;;  %s1505_s18 = sld [smem:[#allocation15_spill]] }
 0x148   : > { %v462_v55 = vld [vmem:[%s1320_s16 + $0x78] sm:$0xff]  ;;  %721 = vmatprep.subr.mxu0 %v478_v54  ;;  %791 = vmatprep.subr.mxu1 %v478_v54  ;;  %v461_v57 = vld [vmem:[%s1320_s16 + $0x70] sm:$0xff]  ;;  %v460_v59 = vld [vmem:[%s1320_s16 + $0x68] sm:$0xff]  ;;  %s581_s13 = sshll.u32 %s1343_s15, 4  ;;  %s1506_s17 = sld [smem:[#allocation21_spill]]  ;;  %s1396_s13 = int_to_ptr.vmem [resolvable:$true] %s581_s13 }
 0x149   : > { %722 = vmatpush3.msra.mxu0 %v462_v55  ;;  %807 = vmatpush3.msra.mxu1 %v462_v55  ;;  %v475_v60 = vld [vmem:[%s1320_s16 + $0xe0] sm:$0xff]  ;;  %v474_v62 = vld [vmem:[%s1320_s16 + $0xd8] sm:$0xff]  ;;  %v473_v0 = vld [vmem:[%s1320_s16 + $0xd0] sm:$0xff]  ;;  %s578_s8 = sadd.s32 %s1108_s24, %s823_s6  ;;  %s1402_s7 = scalar_lea.sflag [#allocation5], %s295_s5 }
 0x14a   : > { %723 = vmatprep.subr.mxu0 %v477_v56  ;;  %792 = vmatprep.subr.mxu1 %v477_v56  ;;  %v459_v61 = vld [vmem:[%s1320_s16 + $0x60] sm:$0xff]  ;;  %v458_v63 = vld [vmem:[%s1320_s16 + $0x58] sm:$0xff]  ;;  %v457_v1 = vld [vmem:[%s1320_s16 + $0x50] sm:$0xff]  ;;  %s718_s26 = sshll.u32 %s578_s8, 7  ;;  %s1000_s10 = scalar_lea.vmem %s1396_s13, 256 }
 0x14b   : > { %724 = vmatpush3.msra.mxu0 %v461_v57  ;;  %808 = vmatpush3.msra.mxu1 %v461_v57  ;;  %v472_v2 = vld [vmem:[%s1320_s16 + $0xc8] sm:$0xff]  ;;  %v471_v4 = vld [vmem:[%s1320_s16 + $0xc0] sm:$0xff]  ;;  %v470_v6 = vld [vmem:[%s1320_s16 + $0xb8] sm:$0xff]  ;;  %p1001_p12 = scmp.ne.s32.totalorder %s1396_s13, %s1000_s10  ;;  %s1134_s30 = smov [#allocation8]  }
 0x14c   : > { %725 = vmatprep.subr.mxu0 %v476_v58  ;;  %793 = vmatprep.subr.mxu1 %v476_v58  ;;  %v456_v3 = vld [vmem:[%s1320_s16 + $0x48] sm:$0xff]  ;;  %v455_v5 = vld [vmem:[%s1320_s16 + $0x40] sm:$0xff]  ;;  %v454_v7 = vld [vmem:[%s1320_s16 + $0x38] sm:$0xff]  ;;  %s1004_s12 = sshll.u32 %s1134_s30, 4  ;;  %s1005_s12 = int_to_ptr.vmem [resolvable:$false] %s1004_s12 }
 0x14d   : > { %726 = vmatpush3.msra.mxu0 %v460_v59  ;;  %809 = vmatpush3.msra.mxu1 %v460_v59  ;;  %v469_v8 = vld [vmem:[%s1320_s16 + $0xb0] sm:$0xff]  ;;  %v468_v10 = vld [vmem:[%s1320_s16 + $0xa8] sm:$0xff]  ;;  %v467_v12 = vld [vmem:[%s1320_s16 + $0xa0] sm:$0xff]  ;;  %p1507_p0 = scmp.ne.s32.totalorder %s1505_s18, 0  ;;  %p1007_p5 = scmp.lt.s32.totalorder %s1396_s13, %s1005_s12 }
 0x14e   : > { %727 = vmatprep.subr.mxu0 %v475_v60  ;;  %794 = vmatprep.subr.mxu1 %v475_v60  ;;  %v453_v9 = vld [vmem:[%s1320_s16 + $0x30] sm:$0xff]  ;;  %v452_v11 = vld [vmem:[%s1320_s16 + $0x28] sm:$0xff]  ;;  %v451_v13 = vld [vmem:[%s1320_s16 + $0x20] sm:$0xff]  ;;  %s1394_s9 = scalar_lea.hbm %s1506_s17, %s718_s26 }
 0x14f   : > { %728 = vmatpush3.msra.mxu0 %v459_v61  ;;  %810 = vmatpush3.msra.mxu1 %v459_v61  ;;  %v466_v14 = vld [vmem:[%s1320_s16 + $0x98] sm:$0xff]  ;;  %v465_v16 = vld [vmem:[%s1320_s16 + $0x90] sm:$0xff]  ;;  %v464_v18 = vld [vmem:[%s1320_s16 + $0x88] sm:$0xff]  ;;  %p1002_p1 = pnand %p1001_p12, %p1507_p0 }
 0x150   : > { %729 = vmatprep.subr.mxu0 %v474_v62  ;;  %795 = vmatprep.subr.mxu1 %v474_v62  ;;  %v450_v15 = vld [vmem:[%s1320_s16 + $0x18] sm:$0xff]  ;;  %v449_v17 = vld [vmem:[%s1320_s16 + $0x10] sm:$0xff]  ;;  %v448_v19 = vld [vmem:[%s1320_s16 + $0x8] sm:$0xff] }
 0x151   : > { %730 = vmatpush3.msra.mxu0 %v458_v63  ;;  %811 = vmatpush3.msra.mxu1 %v458_v63  ;;  %v463_v20 = vld [vmem:[%s1320_s16 + $0x80] sm:$0xff]  ;;  %v446_v23 = vld [vmem:[#allocation2 + $0x8] sm:$0xff]  ;;  %v443_v24 = vld [vmem:[#allocation2 + $0x10] sm:$0xff]  ;;  %p1003_p2 = pneg %p1002_p1 }
 0x152   : > { %731 = vmatprep.subr.mxu0 %v473_v0  ;;  %796 = vmatprep.subr.mxu1 %v473_v0  ;;  %v447_v21 = vld [vmem:[%s1320_s16] sm:$0xff]  ;;  %v445_v25 = vld [vmem:[#allocation2 + $0x18] sm:$0xff] }
 0x153   : > { %732 = vmatpush3.msra.mxu0 %v457_v1  ;;  %812 = vmatpush3.msra.mxu1 %v457_v1  ;;  %v444_v22 = vld [vmem:[#allocation2] sm:$0xff] }
 0x154   : > { %733 = vmatprep.subr.mxu0 %v472_v2  ;;  %797 = vmatprep.subr.mxu1 %v472_v2  ;;  %v714_v28 = vld [vmem:[%s306_s14] ss:$0 sm:$0xff]  ;;  %s1006_s14 = scalar_lea.vmem %s1005_s12, 512 }
 0x155   : > { %734 = vmatpush3.msra.mxu0 %v456_v3  ;;  %813 = vmatpush3.msra.mxu1 %v456_v3  ;;  %p1008_p8 = scmp.lt.s32.totalorder %s1006_s14, %s1000_s10 }
 0x156   : > { %735 = vmatprep.subr.mxu0 %v471_v4  ;;  %798 = vmatprep.subr.mxu1 %v471_v4 }
 0x157   : > { %736 = vmatpush3.msra.mxu0 %v455_v5  ;;  %814 = vmatpush3.msra.mxu1 %v455_v5  ;;  %p1009_p9 = por %p1008_p8, %p1007_p5 }
 0x158   : > { %737 = vmatprep.subr.mxu0 %v470_v6  ;;  %799 = vmatprep.subr.mxu1 %v470_v6 }
 0x159   : > { %738 = vmatpush3.msra.mxu0 %v454_v7  ;;  %815 = vmatpush3.msra.mxu1 %v454_v7  ;;  %p1010_p11 = pnand %p1009_p9, %p1003_p2 }
 0x15a   : > { %739 = vmatprep.subr.mxu0 %v469_v8  ;;  %800 = vmatprep.subr.mxu1 %v469_v8 }
 0x15b   : > { %740 = vmatpush3.msra.mxu0 %v453_v9  ;;  %816 = vmatpush3.msra.mxu1 %v453_v9 }
 0x15c   : > { %741 = vmatprep.subr.mxu0 %v468_v10  ;;  %801 = vmatprep.subr.mxu1 %v468_v10 }
 0x15d   : > { %742 = vmatpush3.msra.mxu0 %v452_v11  ;;  %817 = vmatpush3.msra.mxu1 %v452_v11 }
 0x15e   : > { %743 = vmatprep.subr.mxu0 %v467_v12  ;;  %802 = vmatprep.subr.mxu1 %v467_v12 }
 0x15f   : > { %744 = vmatpush3.msra.mxu0 %v451_v13  ;;  %818 = vmatpush3.msra.mxu1 %v451_v13 }
 0x160   : > { %745 = vmatprep.subr.mxu0 %v466_v14  ;;  %803 = vmatprep.subr.mxu1 %v466_v14 }
 0x161   : > { %746 = vmatpush3.msra.mxu0 %v450_v15  ;;  %819 = vmatpush3.msra.mxu1 %v450_v15 }
 0x162   : > { %747 = vmatprep.subr.mxu0 %v465_v16  ;;  %804 = vmatprep.subr.mxu1 %v465_v16 }
 0x163   : > { %748 = vmatpush3.msra.mxu0 %v449_v17  ;;  %820 = vmatpush3.msra.mxu1 %v449_v17 }
 0x164   : > { %749 = vmatprep.subr.mxu0 %v464_v18  ;;  %805 = vmatprep.subr.mxu1 %v464_v18 }
 0x165   : > { %750 = vmatpush3.msra.mxu0 %v448_v19  ;;  %821 = vmatpush3.msra.mxu1 %v448_v19 }
 0x166   : > { %751 = vmatprep.subr.mxu0 %v463_v20  ;;  %806 = vmatprep.subr.mxu1 %v463_v20 }
 0x167   : > { %752 = vmatpush3.msra.mxu0 %v447_v21  ;;  %822 = vmatpush3.msra.mxu1 %v447_v21 }
 0x168   : > { %550 = vmatprep.mubr.f32.mxu0 %v444_v22  ;;  %555 = vmatprep.mubr.f32.mxu1 %v446_v23 }
 0x169   : > { %551 = vmatmul.mubr.f32.vlgmr.msra.gmra.mxu0 %v443_v24  ;;  %556 = vmatmul.mubr.f32.vlgmr.msra.gmra.mxu1 %v445_v25 }
 0x229   : > { %v753_v26 = vpop.f32.mrf.mxu0  ;;  %v756_v27 = vpop.f32.mrf.mxu1 }
 0x22b   : > { %v754_v29 = vpop.f32.mrf.mxu0  ;;  %v757_v30 = vpop.f32.mrf.mxu1 }
 0x22c   : > { %v755_v31 = vadd.f32 %v754_v29, %v753_v26  ;;  %v758_v32 = vadd.f32 %v757_v30, %v756_v27 }
 0x22e   : > { %v553_v33 = vadd.f32 %v755_v31, %v714_v28  ;;  %v558_v34 = vadd.f32 %v758_v32, %v714_v28 }
 0x230   : > { %v561_v35 = vmax.f32 %v553_v33, 0.0  ;;  %v562_v36 = vmax.f32 %v558_v34, 0.0 }
 0x232   : > { %563 = vst [vmem:[%s1343_s15] sm:$0xff] %v561_v35  ;;  %564 = vst [vmem:[%s1343_s15 + $0x8] sm:$0xff] %v562_v36 }
 0x233   : > { %1013 = shalt.err (!%p1010_p11)
}
 0x234   : > { %s1014_s5 = scalar_lea.hbm %s1394_s9, 256  ;;  %s1018_s28 = scalar_lea.hbm %s1506_s17, 2304 }
 0x235   : > { %p1015_p13 = scmp.ne.s32.totalorder %s1394_s9, %s1014_s5  ;;  %p1019_p3 = scmp.lt.s32.totalorder %s1394_s9, %s1506_s17 }
 0x236   : > { %p1020_p7 = scmp.lt.s32.totalorder %s1018_s28, %s1014_s5 }
 0x237   : > { %p1016_p4 = pnand %p1015_p13, %p1507_p0 }
 0x238   : > { %p1021_p10 = por %p1020_p7, %p1019_p3 }
 0x239   : > { %p1017_p6 = pneg %p1016_p4 }
 0x23b   : > { %p1022_p12 = pnand %p1021_p10, %p1017_p6 }
 0x23d   : > { %1025 = shalt.err (!%p1022_p12)
}
 0x23e   : > { %s1135_s8 = smov 128   ;;  %s1136_s21 = smov 384  }
 0x23f   : > { %s1137_s16 = smov 8  }
 0x240   : > { %830 = dma.vmem_to_hbm [thread:$0]  (%p1507_p0), %s1396_s13, 256, %s1394_s9, %s1402_s7, %s1135_s8, %s1136_s21, %s1137_s16  }
 0x241 PF: > { %s1508_s26 = sld [smem:[#allocation14_spill]] }
 0x242   : > { %s1509_s24 = sld [smem:[#allocation12_spill]] }
 0x243   : > { %s1510_s25 = sld [smem:[#allocation16_spill]] }
 0x247   : > { %p847_p1 = scmp.ge.s32.totalorder %s1508_s26, 2 }
 0x248   : > { %s596_s10 = sand.u32 1, %s1509_s24  }
 0x249   : > { %p1511_p2 = scmp.ne.s32.totalorder %s1510_s25, 0  ;;  %s597_s30 = scalar_lea.sflag [#allocation5], %s596_s10 }
 0x24b   : > { %p841_p5 = pnand %p847_p1, %p1511_p2 }
 0x24d   : > { %p842_p8 = pneg %p841_p5 }
 0x24f   : > { %1079 = dma.done.wait (%p842_p8), %s597_s30, 256  }
 0x250   : > { %1081 = vsyncadd (%p842_p8), %s597_s30, 4294967040  ;;  %s22_s28 = sadd.s32 1, %s1508_s26   ;;  %s1512_s24 = sld [smem:[#allocation13_spill]] }
 0x251   : > { %p19_p9 = scmp.ge.s32.totalorder %s22_s28, 11   ;;  %s1513_s26 = sld [smem:[#allocation17_spill]] }
 0x252   : > { %s1514_s13 = sld [smem:[#allocation18_spill]]  ;;  %s1515_s18 = smov %s1088_s19 }
 0x253   : > { %s1516_s19 = smov %s1092_s20  ;;  %s1517_s20 = smov %s1307_s2 }
 0x254   : > { %s1518_s21 = smov %s1100_s22  ;;  %s1519_s22 = smov %s1104_s23 }
 0x255   : > { %s1520_s23 = smov %s1297_s29  ;;  %s1521_s25 = smov %s1120_s27 }
 0x256   :  { %21 = sbr.rel (!%p19_p9) target bundleno = 14 (0xe), region = 100 }
 0x258   : > { %s1522_s27 = smov %s1514_s13 }
 0x25b   :  { %602 = vsyncpa [#allocation4], 1 }
 0x25c   :  { %604 = vsyncpa [#allocation4 + $0x1], 1 }
 0x25d   :  { %605 = vsyncpa [#allocation7], 1 }
 0x25e   :  { %607 = vsyncpa [#allocation7 + $0x1], 1 }
 0x25f   :  { %608 = vsyncpa [#allocation5], 1 }
 0x260   :  { %610 = vsyncpa [#allocation5 + $0x1], 1 }

</bundles_post_ra>
